<compile_context>
chip_gen: v5e
topology: v5e:2x2
jax: 0.10.0
libtpu: 0.0.40
codegen_flags: <defaults>
</compile_context>

<pallas_src>
import functools

import jax
import jax.numpy as jnp
import numpy as np
from jax.experimental import pallas as pl
from jax.experimental.pallas import tpu as pltpu

BN_EPS = 1e-5


def _round_up(x, m):
    return (x + m - 1) // m * m


# ------------------------------ Pallas kernel -------------------------------

def _conv_bn_relu_kernel(x_ref, w_ref, s_ref, b_ref, o_ref, *, ksize, wp):
    # x_ref: (1, Cin, NF)     zero-padded image, spatial flattened on lanes,
    #                         NF rounded up to a multiple of 128
    # w_ref: (K*K, Cout, Cin) tap-major conv weights        (grid-invariant)
    # s_ref: (Cout, 1)        folded BatchNorm scale        (grid-invariant)
    # b_ref: (Cout, 1)        folded BatchNorm bias         (grid-invariant)
    # o_ref: (1, Cout, Nw)    "wide" output, Nw = Ho * Wp (the K-1 garbage
    #                         columns per row are stripped by the wrapper)
    cout = o_ref.shape[1]
    nw = o_ref.shape[2]

    x = x_ref[0].astype(jnp.float32)                       # (Cin, NF)
    acc = jnp.zeros((cout, nw), jnp.float32)
    for dy in range(ksize):                                # statically unrolled
        for dx in range(ksize):
            off = dy * wp + dx
            rhs = x[:, off:off + nw]                       # contiguous lane slice
            wt = w_ref[dy * ksize + dx].astype(jnp.float32)   # (Cout, Cin)
            acc = acc + jnp.dot(wt, rhs,
                                preferred_element_type=jnp.float32)   # MXU
    y = acc * s_ref[...] + b_ref[...]                      # folded BN (inference)
    o_ref[0] = jnp.maximum(y, 0.0).astype(o_ref.dtype)     # ReLU + lane-dense store


# --------------------------------- wrappers ---------------------------------

def pixel_shuffle(x, r):
    """PyTorch-equivalent nn.PixelShuffle(r): (B, C*r^2, H, W) -> (B, C, H*r, W*r)."""
    B, C, H, W = x.shape
    c = C // (r * r)
    x = x.reshape(B, c, r, r, H, W)
    x = x.transpose(0, 1, 4, 2, 5, 3)
    return x.reshape(B, c, H * r, W * r)


def deconv_unit2_forward(x, w, bn, *, kernel_size, padding, upscale_factor=2):
    """x: (B, in_chs, H, W) NCHW; w: (out_chs, in_chs//r^2, K, K) OIHW;
    bn = (gamma, beta, running_mean, running_var)."""
    r, k, p = upscale_factor, kernel_size, padding

    # PixelShuffle (layout-only) + zero pad + flatten spatial onto lanes.
    xs = pixel_shuffle(x, r)                               # (B, Cin, H2, W2)
    B, cin, h2, w2 = xs.shape
    cout = w.shape[0]
    hp, wp = h2 + 2 * p, w2 + 2 * p                        # padded spatial
    ho, wo = hp - k + 1, wp - k + 1                        # conv output (stride 1)
    nw = ho * wp                                           # wide row-major width
    nf = _round_up(max(hp * wp, (k - 1) * (wp + 1) + nw), 128)

    xp = jnp.pad(xs, ((0, 0), (0, 0), (p, p), (p, p)))
    xf = xp.reshape(B, cin, hp * wp)
    xf = jnp.pad(xf, ((0, 0), (0, 0), (0, nf - hp * wp)))  # zero tail to NF

    # Fold BN (inference) into per-channel scale/bias; tap-major weights.
    gamma, beta, mean, var = bn
    scale = gamma / jnp.sqrt(var + BN_EPS)
    bias = beta - mean * scale
    wg = w.transpose(2, 3, 0, 1).reshape(k * k, cout, cin)

    kernel = functools.partial(_conv_bn_relu_kernel, ksize=k, wp=wp)
    out_wide = pl.pallas_call(
        kernel,
        out_shape=jax.ShapeDtypeStruct((B, cout, nw), x.dtype),
        grid=(B,),
        in_specs=[
            pl.BlockSpec((1, cin, nf), lambda b: (b, 0, 0)),
            pl.BlockSpec((k * k, cout, cin), lambda b: (0, 0, 0)),   # resident
            pl.BlockSpec((cout, 1), lambda b: (0, 0)),               # resident
            pl.BlockSpec((cout, 1), lambda b: (0, 0)),               # resident
        ],
        out_specs=pl.BlockSpec((1, cout, nw), lambda b: (b, 0, 0)),
        compiler_params=pltpu.CompilerParams(
            dimension_semantics=("parallel",)),
    )(xf, wg, scale.reshape(cout, 1), bias.reshape(cout, 1))

    # Strip the (K-1) garbage columns per output row introduced by the flat
    # (row-major, padded-width) layout.
    out = out_wide.reshape(B, cout, ho, wp)[:, :, :, :wo]
    return out


# ----------------------------- pure-JAX reference ---------------------------

def ref_forward(x, w, bn, *, kernel_size, padding, upscale_factor=2):
    xs = pixel_shuffle(x, upscale_factor)
    y = jax.lax.conv_general_dilated(
        xs, w, window_strides=(1, 1),
        padding=((padding, padding), (padding, padding)),
        dimension_numbers=("NCHW", "OIHW", "NCHW"))
    gamma, beta, mean, var = bn
    inv = gamma / jnp.sqrt(var + BN_EPS)
    y = (y - mean[None, :, None, None]) * inv[None, :, None, None] \
        + beta[None, :, None, None]
    return jnp.maximum(y, 0.0)


# ------------------------------------ main -----------------------------------

if __name__ == "__main__":
    # DeconvUnit2(in_chs=16, out_chs=16, kernel_size=3, padding=1, upscale=2)
    B, in_chs, out_chs = 2, 16, 16
    in_h = in_w = 8
    k, p, r = 3, 1, 2
    conv_in = in_chs // (r * r)

    key = jax.random.PRNGKey(0)
    k1, k2, k3, k4, k5, k6 = jax.random.split(key, 6)

    x = jax.random.normal(k1, (B, in_chs, in_h, in_w), jnp.float32)
    w = 0.1 * jax.random.normal(k2, (out_chs, conv_in, k, k), jnp.float32)
    gamma = jax.random.uniform(k3, (out_chs,), jnp.float32, 0.5, 1.5)
    beta = 0.1 * jax.random.normal(k4, (out_chs,), jnp.float32)
    mean = 0.1 * jax.random.normal(k5, (out_chs,), jnp.float32)
    var = jax.random.uniform(k6, (out_chs,), jnp.float32, 0.5, 1.5)
    bn = (gamma, beta, mean, var)

    fwd = jax.jit(functools.partial(deconv_unit2_forward,
                                    kernel_size=k, padding=p,
                                    upscale_factor=r))
    out = jax.block_until_ready(fwd(x, w, bn))

    ref = ref_forward(x, w, bn, kernel_size=k, padding=p, upscale_factor=r)
    assert out.shape == (B, out_chs, in_h * r, in_w * r), out.shape
    np.testing.assert_allclose(np.asarray(out), np.asarray(ref),
                               rtol=1e-4, atol=1e-4)
    print("KERNEL_OK")
</pallas_src>

<mosaic_0001>
module attributes {stable_mosaic.version = 11 : i64} {
  func.func @_conv_bn_relu_kernel(%arg0: i32, %arg1: memref<1x4x384xf32, #tpu.memory_space<vmem>>, %arg2: memref<9x16x4xf32, #tpu.memory_space<vmem>>, %arg3: memref<16x1xf32, #tpu.memory_space<vmem>>, %arg4: memref<16x1xf32, #tpu.memory_space<vmem>>, %arg5: memref<1x16x288xf32, #tpu.memory_space<vmem>>) attributes {dimension_semantics = [#tpu.dimension_semantics<parallel>], iteration_bounds = array<i64: 2>, scalar_prefetch = 0 : i64, scratch_operands = 0 : i64, tpu.core_type = #tpu.core_type<tc>, window_params = [{transform_indices = @transform_0, window_bounds = array<i64: 1, 4, 384>}, {pipeline_mode = #tpu.pipeline_mode<synchronous>, transform_indices = @transform_1, window_bounds = array<i64: 9, 16, 4>}, {pipeline_mode = #tpu.pipeline_mode<synchronous>, transform_indices = @transform_2, window_bounds = array<i64: 16, 1>}, {pipeline_mode = #tpu.pipeline_mode<synchronous>, transform_indices = @transform_3, window_bounds = array<i64: 16, 1>}, {transform_indices = @transform_4, window_bounds = array<i64: 1, 16, 288>}]} {
    %c0 = arith.constant 0 : index
    %c0_0 = arith.constant 0 : index
    %c0_1 = arith.constant 0 : index
    %0 = vector.load %arg1[%c0, %c0_0, %c0_1] : memref<1x4x384xf32, #tpu.memory_space<vmem>>, vector<1x4x384xf32>
    %1 = vector.shape_cast %0 : vector<1x4x384xf32> to vector<4x384xf32>
    %cst = arith.constant 0.000000e+00 : f32
    %2 = vector.broadcast %cst : f32 to vector<16x288xf32>
    %3 = vector.extract_strided_slice %1 {offsets = [0, 0], sizes = [4, 288], strides = [1, 1]} : vector<4x384xf32> to vector<4x288xf32>
    %c0_2 = arith.constant 0 : index
    %c0_3 = arith.constant 0 : index
    %c0_4 = arith.constant 0 : index
    %4 = vector.load %arg2[%c0_2, %c0_3, %c0_4] : memref<9x16x4xf32, #tpu.memory_space<vmem>>, vector<1x16x4xf32>
    %5 = vector.shape_cast %4 : vector<1x16x4xf32> to vector<16x4xf32>
    %cst_5 = arith.constant dense<0.000000e+00> : vector<16x288xf32>
    %6 = tpu.matmul %5, %3, %cst_5 {dimension_numbers = #tpu.dot_dimension_numbers<[1], [0], [0], [1], [0, 0, 1, 1], [], []>} : vector<16x4xf32>, vector<4x288xf32>, vector<16x288xf32> -> vector<16x288xf32>
    %7 = arith.addf %2, %6 : vector<16x288xf32>
    %8 = vector.extract_strided_slice %1 {offsets = [0, 1], sizes = [4, 288], strides = [1, 1]} : vector<4x384xf32> to vector<4x288xf32>
    %c1 = arith.constant 1 : index
    %c0_6 = arith.constant 0 : index
    %c0_7 = arith.constant 0 : index
    %9 = vector.load %arg2[%c1, %c0_6, %c0_7] : memref<9x16x4xf32, #tpu.memory_space<vmem>>, vector<1x16x4xf32>
    %10 = vector.shape_cast %9 : vector<1x16x4xf32> to vector<16x4xf32>
    %cst_8 = arith.constant dense<0.000000e+00> : vector<16x288xf32>
    %11 = tpu.matmul %10, %8, %cst_8 {dimension_numbers = #tpu.dot_dimension_numbers<[1], [0], [0], [1], [0, 0, 1, 1], [], []>} : vector<16x4xf32>, vector<4x288xf32>, vector<16x288xf32> -> vector<16x288xf32>
    %12 = arith.addf %7, %11 : vector<16x288xf32>
    %13 = vector.extract_strided_slice %1 {offsets = [0, 2], sizes = [4, 288], strides = [1, 1]} : vector<4x384xf32> to vector<4x288xf32>
    %c2 = arith.constant 2 : index
    %c0_9 = arith.constant 0 : index
    %c0_10 = arith.constant 0 : index
    %14 = vector.load %arg2[%c2, %c0_9, %c0_10] : memref<9x16x4xf32, #tpu.memory_space<vmem>>, vector<1x16x4xf32>
    %15 = vector.shape_cast %14 : vector<1x16x4xf32> to vector<16x4xf32>
    %cst_11 = arith.constant dense<0.000000e+00> : vector<16x288xf32>
    %16 = tpu.matmul %15, %13, %cst_11 {dimension_numbers = #tpu.dot_dimension_numbers<[1], [0], [0], [1], [0, 0, 1, 1], [], []>} : vector<16x4xf32>, vector<4x288xf32>, vector<16x288xf32> -> vector<16x288xf32>
    %17 = arith.addf %12, %16 : vector<16x288xf32>
    %18 = vector.extract_strided_slice %1 {offsets = [0, 18], sizes = [4, 288], strides = [1, 1]} : vector<4x384xf32> to vector<4x288xf32>
    %c3 = arith.constant 3 : index
    %c0_12 = arith.constant 0 : index
    %c0_13 = arith.constant 0 : index
    %19 = vector.load %arg2[%c3, %c0_12, %c0_13] : memref<9x16x4xf32, #tpu.memory_space<vmem>>, vector<1x16x4xf32>
    %20 = vector.shape_cast %19 : vector<1x16x4xf32> to vector<16x4xf32>
    %cst_14 = arith.constant dense<0.000000e+00> : vector<16x288xf32>
    %21 = tpu.matmul %20, %18, %cst_14 {dimension_numbers = #tpu.dot_dimension_numbers<[1], [0], [0], [1], [0, 0, 1, 1], [], []>} : vector<16x4xf32>, vector<4x288xf32>, vector<16x288xf32> -> vector<16x288xf32>
    %22 = arith.addf %17, %21 : vector<16x288xf32>
    %23 = vector.extract_strided_slice %1 {offsets = [0, 19], sizes = [4, 288], strides = [1, 1]} : vector<4x384xf32> to vector<4x288xf32>
    %c4 = arith.constant 4 : index
    %c0_15 = arith.constant 0 : index
    %c0_16 = arith.constant 0 : index
    %24 = vector.load %arg2[%c4, %c0_15, %c0_16] : memref<9x16x4xf32, #tpu.memory_space<vmem>>, vector<1x16x4xf32>
    %25 = vector.shape_cast %24 : vector<1x16x4xf32> to vector<16x4xf32>
    %cst_17 = arith.constant dense<0.000000e+00> : vector<16x288xf32>
    %26 = tpu.matmul %25, %23, %cst_17 {dimension_numbers = #tpu.dot_dimension_numbers<[1], [0], [0], [1], [0, 0, 1, 1], [], []>} : vector<16x4xf32>, vector<4x288xf32>, vector<16x288xf32> -> vector<16x288xf32>
    %27 = arith.addf %22, %26 : vector<16x288xf32>
    %28 = vector.extract_strided_slice %1 {offsets = [0, 20], sizes = [4, 288], strides = [1, 1]} : vector<4x384xf32> to vector<4x288xf32>
    %c5 = arith.constant 5 : index
    %c0_18 = arith.constant 0 : index
    %c0_19 = arith.constant 0 : index
    %29 = vector.load %arg2[%c5, %c0_18, %c0_19] : memref<9x16x4xf32, #tpu.memory_space<vmem>>, vector<1x16x4xf32>
    %30 = vector.shape_cast %29 : vector<1x16x4xf32> to vector<16x4xf32>
    %cst_20 = arith.constant dense<0.000000e+00> : vector<16x288xf32>
    %31 = tpu.matmul %30, %28, %cst_20 {dimension_numbers = #tpu.dot_dimension_numbers<[1], [0], [0], [1], [0, 0, 1, 1], [], []>} : vector<16x4xf32>, vector<4x288xf32>, vector<16x288xf32> -> vector<16x288xf32>
    %32 = arith.addf %27, %31 : vector<16x288xf32>
    %33 = vector.extract_strided_slice %1 {offsets = [0, 36], sizes = [4, 288], strides = [1, 1]} : vector<4x384xf32> to vector<4x288xf32>
    %c6 = arith.constant 6 : index
    %c0_21 = arith.constant 0 : index
    %c0_22 = arith.constant 0 : index
    %34 = vector.load %arg2[%c6, %c0_21, %c0_22] : memref<9x16x4xf32, #tpu.memory_space<vmem>>, vector<1x16x4xf32>
    %35 = vector.shape_cast %34 : vector<1x16x4xf32> to vector<16x4xf32>
    %cst_23 = arith.constant dense<0.000000e+00> : vector<16x288xf32>
    %36 = tpu.matmul %35, %33, %cst_23 {dimension_numbers = #tpu.dot_dimension_numbers<[1], [0], [0], [1], [0, 0, 1, 1], [], []>} : vector<16x4xf32>, vector<4x288xf32>, vector<16x288xf32> -> vector<16x288xf32>
    %37 = arith.addf %32, %36 : vector<16x288xf32>
    %38 = vector.extract_strided_slice %1 {offsets = [0, 37], sizes = [4, 288], strides = [1, 1]} : vector<4x384xf32> to vector<4x288xf32>
    %c7 = arith.constant 7 : index
    %c0_24 = arith.constant 0 : index
    %c0_25 = arith.constant 0 : index
    %39 = vector.load %arg2[%c7, %c0_24, %c0_25] : memref<9x16x4xf32, #tpu.memory_space<vmem>>, vector<1x16x4xf32>
    %40 = vector.shape_cast %39 : vector<1x16x4xf32> to vector<16x4xf32>
    %cst_26 = arith.constant dense<0.000000e+00> : vector<16x288xf32>
    %41 = tpu.matmul %40, %38, %cst_26 {dimension_numbers = #tpu.dot_dimension_numbers<[1], [0], [0], [1], [0, 0, 1, 1], [], []>} : vector<16x4xf32>, vector<4x288xf32>, vector<16x288xf32> -> vector<16x288xf32>
    %42 = arith.addf %37, %41 : vector<16x288xf32>
    %43 = vector.extract_strided_slice %1 {offsets = [0, 38], sizes = [4, 288], strides = [1, 1]} : vector<4x384xf32> to vector<4x288xf32>
    %c8 = arith.constant 8 : index
    %c0_27 = arith.constant 0 : index
    %c0_28 = arith.constant 0 : index
    %44 = vector.load %arg2[%c8, %c0_27, %c0_28] : memref<9x16x4xf32, #tpu.memory_space<vmem>>, vector<1x16x4xf32>
    %45 = vector.shape_cast %44 : vector<1x16x4xf32> to vector<16x4xf32>
    %cst_29 = arith.constant dense<0.000000e+00> : vector<16x288xf32>
    %46 = tpu.matmul %45, %43, %cst_29 {dimension_numbers = #tpu.dot_dimension_numbers<[1], [0], [0], [1], [0, 0, 1, 1], [], []>} : vector<16x4xf32>, vector<4x288xf32>, vector<16x288xf32> -> vector<16x288xf32>
    %47 = arith.addf %42, %46 : vector<16x288xf32>
    %c0_30 = arith.constant 0 : index
    %c0_31 = arith.constant 0 : index
    %48 = vector.load %arg3[%c0_30, %c0_31] : memref<16x1xf32, #tpu.memory_space<vmem>>, vector<16x1xf32>
    %49 = vector.broadcast %48 : vector<16x1xf32> to vector<16x288xf32>
    %50 = arith.mulf %47, %49 : vector<16x288xf32>
    %c0_32 = arith.constant 0 : index
    %c0_33 = arith.constant 0 : index
    %51 = vector.load %arg4[%c0_32, %c0_33] : memref<16x1xf32, #tpu.memory_space<vmem>>, vector<16x1xf32>
    %52 = vector.broadcast %51 : vector<16x1xf32> to vector<16x288xf32>
    %53 = arith.addf %50, %52 : vector<16x288xf32>
    %cst_34 = arith.constant 0.000000e+00 : f32
    %54 = vector.broadcast %cst_34 : f32 to vector<16x288xf32>
    %55 = arith.maximumf %53, %54 : vector<16x288xf32>
    %c0_35 = arith.constant 0 : index
    %c0_36 = arith.constant 0 : index
    %c0_37 = arith.constant 0 : index
    %56 = vector.load %arg5[%c0_35, %c0_36, %c0_37] : memref<1x16x288xf32, #tpu.memory_space<vmem>>, vector<1x16x288xf32>
    %57 = vector.shape_cast %56 : vector<1x16x288xf32> to vector<16x288xf32>
    %58 = vector.shape_cast %55 : vector<16x288xf32> to vector<1x16x288xf32>
    tpu.vector_store %arg5[%c0_35, %c0_36, %c0_37], %58 {strides = array<i32>} : memref<1x16x288xf32, #tpu.memory_space<vmem>>, vector<1x16x288xf32>,
    return
  }
  func.func @transform_0(%arg0: i32) -> (i32, i32, i32) {
    %c0_i32 = arith.constant 0 : i32
    %c0_i32_0 = arith.constant 0 : i32
    %c0_i32_1 = arith.constant 0 : i32
    return %arg0, %c0_i32, %c0_i32_0 : i32, i32, i32
  }
  func.func @transform_1(%arg0: i32) -> (i32, i32, i32) {
    %c0_i32 = arith.constant 0 : i32
    %c0_i32_0 = arith.constant 0 : i32
    %c0_i32_1 = arith.constant 0 : i32
    %c0_i32_2 = arith.constant 0 : i32
    return %c0_i32, %c0_i32_0, %c0_i32_1 : i32, i32, i32
  }
  func.func @transform_2(%arg0: i32) -> (i32, i32) {
    %c0_i32 = arith.constant 0 : i32
    %c0_i32_0 = arith.constant 0 : i32
    %c0_i32_1 = arith.constant 0 : i32
    return %c0_i32, %c0_i32_0 : i32, i32
  }
  func.func @transform_3(%arg0: i32) -> (i32, i32) {
    %c0_i32 = arith.constant 0 : i32
    %c0_i32_0 = arith.constant 0 : i32
    %c0_i32_1 = arith.constant 0 : i32
    return %c0_i32, %c0_i32_0 : i32, i32
  }
  func.func @transform_4(%arg0: i32) -> (i32, i32, i32) {
    %c0_i32 = arith.constant 0 : i32
    %c0_i32_0 = arith.constant 0 : i32
    %c0_i32_1 = arith.constant 0 : i32
    return %arg0, %c0_i32, %c0_i32_0 : i32, i32, i32
  }
}

</mosaic_0001>

<bundles_post_ra>
// kernel: deconv_unit2_forward.1
= control target key start
LH: loop header
LB: loop body
LE: loop exit
PB: predicated region body
PF: predicated region fallthrough
CT: control target
= control target key end

     0   :  { %s1402_s15 = smov 0   ;;  %s1612_s0 = inlined_call_operand.vmem [shape: f32[2,4,384], index: 0, kind: input, shape index: {}]   ;;  %s1613_s1 = inlined_call_operand.vmem [shape: f32[9,16,4], index: 1, kind: input, shape index: {}]   ;;  %s1614_s2 = inlined_call_operand.vmem [shape: f32[16,1], index: 2, kind: input, shape index: {}]   ;;  %s1615_s3 = inlined_call_operand.vmem [shape: f32[16,1], index: 3, kind: input, shape index: {}]   ;;  %s1616_s4 = inlined_call_operand.vmem [shape: f32[2,16,288], index: 4, kind: output, shape index: {}]  }
   0x1 LB: > { %s1231_s16 = sadd.s32 4294967295, %s1366_s15   ;;  %p1235_p0 = scmp.ge.s32.totalorder %s1366_s15, 1  ;;  %s1366_s15 = sphi %s1402_s15, %s14_s15  }
   0x2   : > { %p162_p1 = scmp.lt.s32.totalorder %s1366_s15, 3 }
   0x4   : > { %p163_p2 = pnand %p1235_p0, %p162_p1 }
   0x5   : > { %p188_p3 = scmp.lt.s32.totalorder (!%p163_p2), %s1231_s16, 1  ;;  %s1368_s21 = smov (!%p163_p2), 127  }
   0x6   : > { %166 = sbr.rel (%p163_p2) target bundleno = 388 (0x184), region = 36  ;;  %s1369_s22 = smov (!%p163_p2), 126  }
   0x7   : > { %s1370_s23 = smov (!%p163_p2), 110   ;;  %s1371_s24 = smov (!%p163_p2), 109  }
   0x8   : > { %s1372_s25 = smov (!%p163_p2), 108   ;;  %s1373_s26 = smov (!%p163_p2), 92  }
   0x9   : > { %s1374_s27 = smov (!%p163_p2), 91   ;;  %s1375_s28 = smov (!%p163_p2), 90  }
   0xb   : > { %s1618_s16 = smov (!%p188_p3, %s1231_s16), 1  ;;  %vm229_vm0 = vcmask 1043456   ;;  %vm219_vm1 = vcmask 1039360   ;;  %v1238_v32 = vld [vmem:[%s1613_s1 + $0x10] sm:$0xff]  ;;  %vm222_vm2 = vcmask 31744   ;;  %v1239_v35 = vld [vmem:[%s1613_s1 + $0x18] sm:$0xff] }
   0xc   : > { %s1338_s17 = smul.u32 12, %s1618_s16  ;;  %vm407_vm3 = vcmask 1031168   ;;  %v200_v39 = vld [vmem:[%s1613_s1] sm:$0xff]  ;;  %v201_v44 = vld [vmem:[%s1613_s1 + $0x8] sm:$0xff]  ;;  %vm512_vm4 = vcmask 900096   ;;  %vm617_vm5 = vcmask 891904  }
   0xd   : > { %v1258_v41 = vld [vmem:[%s1613_s1 + $0x20] sm:$0xff]  ;;  %v1259_v45 = vld [vmem:[%s1613_s1 + $0x28] sm:$0xff]  ;;  %v1269_v51 = vld [vmem:[%s1613_s1 + $0x30] sm:$0xff]  ;;  %vm722_vm6 = vcmask 883712   ;;  %vm827_vm7 = vcmask 752640   ;;  %vm932_vm8 = vcmask 744448  }
   0xe   : > { %s192_s20 = scalar_lea.vmem %s1612_s0, %s1338_s17  ;;  %v1270_v57 = vld [vmem:[%s1613_s1 + $0x38] sm:$0xff]  ;;  %v1280_v61 = vld [vmem:[%s1613_s1 + $0x40] sm:$0xff]  ;;  %vm1037_vm9 = vcmask 736256   ;;  %vm1171_vm10 = vcmask 261120  }
   0xf   : > { %v199_v0 = vld [vmem:[%s192_s20 + $0x8] sm:$0xf]  ;;  %v1416_v1 = vld [vmem:[%s192_s20] sm:$0xff] }
  0x10   : > { %209 = vst [vmem:[#allocation1 + $0x10] ss:$2 sm:$0xff] %v199_v0 }
  0x11   : > { %207 = vst [vmem:[#allocation1] ss:$2 sm:$0xff] %v1416_v1 }
  0x17   : > { %v212_v2 = vld.sshfl [vmem:[#allocation1 + $0x10] sm:$0xff pattern:$0x75316420] }
  0x18   : > { %217 = vrot.lane.b32.xlu0 %v212_v2, %s1368_s21  ;;  %307 = vst [vmem:[#allocation1 + $0x10] ss:$2 sm:$0xff] %v199_v0  ;;  %v211_v3 = vld.sshfl [vmem:[#allocation1 + $0x8] sm:$0xff pattern:$0x75316420] }
  0x19   : > { %215 = vrot.lane.b32.xlu1 %v211_v3, %s1368_s21  ;;  %v210_v4 = vld.sshfl [vmem:[#allocation1] sm:$0xff pattern:$0x75316420] }
  0x1a   : > { %305 = vst [vmem:[#allocation1] ss:$2 sm:$0xff] %v1416_v1 }
  0x1f   : > { %v1420_v5 = vld.sshfl [vmem:[#allocation1 + $0x10] sm:$0xff pattern:$0x75316420] }
  0x20   : > { %213 = vrot.lane.b32.xlu0 %v210_v4, %s1368_s21  ;;  %397 = vst [vmem:[#allocation1 + $0x10] ss:$2 sm:$0xff] %v199_v0  ;;  %v1281_v4 = vld [vmem:[%s1613_s1 + $0x48] sm:$0xff] }
  0x21   : > { %v1422_v6 = vld.sshfl [vmem:[#allocation1] sm:$0xff pattern:$0x75316420]  ;;  %v1424_v7 = vld.sshfl [vmem:[#allocation1 + $0x8] sm:$0xff pattern:$0x75316420] }
  0x22   : > { %395 = vst [vmem:[#allocation1] ss:$2 sm:$0xff] %v1416_v1 }
  0x27   : > { %v400_v8 = vld.sshfl [vmem:[#allocation1 + $0x10] sm:$0xff pattern:$0x75316420] }
  0x28   : > { %502 = vst [vmem:[#allocation1 + $0x10] ss:$2 sm:$0xff] %v199_v0 }
  0x29   : > { %v398_v9 = vld.sshfl [vmem:[#allocation1] sm:$0xff pattern:$0x75316420]  ;;  %v399_v10 = vld.sshfl [vmem:[#allocation1 + $0x8] sm:$0xff pattern:$0x75316420] }
  0x2a   : > { %401 = vrot.lane.b32.xlu1 %v398_v9, %s1369_s22  ;;  %403 = vrot.lane.b32.xlu2 %v399_v10, %s1369_s22  ;;  %500 = vst [vmem:[#allocation1] ss:$2 sm:$0xff] %v1416_v1  ;;  %v1291_v10 = vld [vmem:[%s1613_s1 + $0x50] sm:$0xff] }
  0x2f   : > { %v505_v11 = vld.sshfl [vmem:[#allocation1 + $0x10] sm:$0xff pattern:$0x75316420] }
  0x30   : > { %607 = vst [vmem:[#allocation1 + $0x10] ss:$2 sm:$0xff] %v199_v0 }
  0x31   : > { %v504_v12 = vld.sshfl [vmem:[#allocation1 + $0x8] sm:$0xff pattern:$0x75316420]  ;;  %v503_v13 = vld.sshfl [vmem:[#allocation1] sm:$0xff pattern:$0x75316420] }
  0x32   : > { %510 = vrot.lane.b32.xlu1 %v505_v11, %s1370_s23  ;;  %508 = vrot.lane.b32.xlu0 %v504_v12, %s1370_s23  ;;  %605 = vst [vmem:[#allocation1] ss:$2 sm:$0xff] %v1416_v1  ;;  %v1302_v12 = vld [vmem:[%s1613_s1 + $0x60] sm:$0xff] }
  0x33   : > { %405 = vrot.lane.b32.xlu2 %v400_v8, %s1369_s22 }
  0x37   : > { %v610_v14 = vld.sshfl [vmem:[#allocation1 + $0x10] sm:$0xff pattern:$0x75316420] }
  0x38   : > { %712 = vst [vmem:[#allocation1 + $0x10] ss:$2 sm:$0xff] %v199_v0 }
  0x39   : > { %v609_v15 = vld.sshfl [vmem:[#allocation1 + $0x8] sm:$0xff pattern:$0x75316420]  ;;  %v608_v16 = vld.sshfl [vmem:[#allocation1] sm:$0xff pattern:$0x75316420] }
  0x3a   : > { %611 = vrot.lane.b32.xlu1 %v608_v16, %s1371_s24  ;;  %710 = vst [vmem:[#allocation1] ss:$2 sm:$0xff] %v1416_v1  ;;  %615 = vrot.lane.b32.xlu0 %v610_v14, %s1371_s24 }
  0x3b   : > { %506 = vrot.lane.b32.xlu2 %v503_v13, %s1370_s23 }
  0x3f   : > { %v715_v17 = vld.sshfl [vmem:[#allocation1 + $0x10] sm:$0xff pattern:$0x75316420] }
  0x40   : > { %817 = vst [vmem:[#allocation1 + $0x10] ss:$2 sm:$0xff] %v199_v0 }
  0x41   : > { %v714_v18 = vld.sshfl [vmem:[#allocation1 + $0x8] sm:$0xff pattern:$0x75316420]  ;;  %v713_v19 = vld.sshfl [vmem:[#allocation1] sm:$0xff pattern:$0x75316420] }
  0x42   : > { %718 = vrot.lane.b32.xlu1 %v714_v18, %s1372_s25  ;;  %716 = vrot.lane.b32.xlu0 %v713_v19, %s1372_s25  ;;  %815 = vst [vmem:[#allocation1] ss:$2 sm:$0xff] %v1416_v1  ;;  %v1303_v18 = vld [vmem:[%s1613_s1 + $0x68] sm:$0xff]  ;;  %v1127_v19 = vld [vmem:[%s1614_s2] sm:$0xff] }
  0x43   : > { %613 = vrot.lane.b32.xlu2 %v609_v15, %s1371_s24 }
  0x47   : > { %v820_v20 = vld.sshfl [vmem:[#allocation1 + $0x10] sm:$0xff pattern:$0x75316420] }
  0x48   : > { %922 = vst [vmem:[#allocation1 + $0x10] ss:$2 sm:$0xff] %v199_v0 }
  0x49   : > { %v819_v21 = vld.sshfl [vmem:[#allocation1 + $0x8] sm:$0xff pattern:$0x75316420]  ;;  %v818_v22 = vld.sshfl [vmem:[#allocation1] sm:$0xff pattern:$0x75316420] }
  0x4a   : > { %720 = vrot.lane.b32.xlu1 %v715_v17, %s1372_s25  ;;  %823 = vrot.lane.b32.xlu0 %v819_v21, %s1373_s26  ;;  %920 = vst [vmem:[#allocation1] ss:$2 sm:$0xff] %v1416_v1  ;;  %v1292_v17 = vld [vmem:[%s1613_s1 + $0x58] sm:$0xff]  ;;  %v1376_v21 = vmov 0   ;;  %s1339_s25 = smul.u32 48, %s1618_s16 }
  0x4b   : > { %821 = vrot.lane.b32.xlu2 %v818_v22, %s1373_s26  ;;  %1357 = vset.pattern.permute.xlu0 %v1376_v21  ;;  %v1313_v22 = vld [vmem:[%s1613_s1 + $0x70] sm:$0xff] }
  0x4c   : > { %1358 = vset.pattern.permute.xlu1 %v1376_v21  ;;  %1359 = vset.pattern.permute.xlu2 %v1376_v21 }
  0x4f   : > { %v925_v23 = vld.sshfl [vmem:[#allocation1 + $0x10] sm:$0xff pattern:$0x75316420] }
  0x50   : > { %1027 = vst [vmem:[#allocation1 + $0x10] ss:$2 sm:$0xff] %v199_v0 }
  0x51   : > { %v924_v24 = vld.sshfl [vmem:[#allocation1 + $0x8] sm:$0xff pattern:$0x75316420]  ;;  %v923_v25 = vld.sshfl [vmem:[#allocation1] sm:$0xff pattern:$0x75316420] }
  0x52   : > { %930 = vrot.lane.b32.xlu1 %v925_v23, %s1374_s27  ;;  %928 = vrot.lane.b32.xlu0 %v924_v24, %s1374_s27  ;;  %1025 = vst [vmem:[#allocation1] ss:$2 sm:$0xff] %v1416_v1  ;;  %v1146_v23 = vld [vmem:[%s1615_s3 + $0x8] sm:$0xff]  ;;  %v1314_v24 = vld [vmem:[%s1613_s1 + $0x78] sm:$0xff] }
  0x53   : > { %825 = vrot.lane.b32.xlu2 %v820_v20, %s1373_s26  ;;  %v1128_v20 = vld [vmem:[%s1614_s2 + $0x8] sm:$0xff] }
  0x57   : > { %v1030_v26 = vld.sshfl [vmem:[#allocation1 + $0x10] sm:$0xff pattern:$0x75316420] }
  0x59   : > { %v1028_v27 = vld.sshfl [vmem:[#allocation1] sm:$0xff pattern:$0x75316420]  ;;  %v1029_v28 = vld.sshfl [vmem:[#allocation1 + $0x8] sm:$0xff pattern:$0x75316420] }
  0x5a   : > { %1035 = vrot.lane.b32.xlu0 %v1030_v26, %s1375_s28  ;;  %1031 = vrot.lane.b32.xlu1 %v1028_v27, %s1375_s28  ;;  %v1325_v26 = vld [vmem:[%s1613_s1 + $0x88] sm:$0xff]  ;;  %v1145_v27 = vld [vmem:[%s1615_s3] sm:$0xff] }
  0x5b   : > { %926 = vrot.lane.b32.xlu2 %v923_v25, %s1374_s27  ;;  %v1324_v25 = vld [vmem:[%s1613_s1 + $0x80] sm:$0xff] }
  0x62   : > { %1131 = vperm.xlu0 %1357, %v1127_v19   ;;  %1136 = vperm.xlu1 %1358, %v1128_v20  }
  0x63   : > { %1033 = vrot.lane.b32.xlu2 %v1029_v28, %s1375_s28  ;;  %s1599_s28 = scalar_lea.vmem %s1616_s4, %s1339_s25 }
  0x6a   : > { %1154 = vperm.xlu1 %1358, %v1146_v23  }
  0x6b   : > { %1149 = vperm.xlu2 %1359, %v1145_v27  }
  0x84   : > { %v404_v29 = vpop.permute.xlu2 %403 }
  0x8a   : > { %v218_v30 = vpop.permute.xlu0 %217 }
  0x8b   : > { %v216_v31 = vpop.permute.xlu1 %215  ;;  %1246 = vmatpush.msk.msra.mxu2 %vm229_vm0, %v218_v30 }
  0x8c   : > { %v221_v33 = vsel %vm219_vm1, %v216_v31, %v218_v30  ;;  %1247 = vmatmul.msk.f32.vlgmr.msra.gmra.mxu2 %vm222_vm2, %v1238_v32 }
  0x8d   : > { %1243 = vmatpush.msk.msra.mxu1 %vm229_vm0, %v221_v33  ;;  %v406_v36 = vpop.permute.xlu2 %405 }
  0x8e   : > { %1244 = vmatmul.msk.f32.vlgmr.msra.gmra.mxu1 %vm222_vm2, %v1238_v32  ;;  %v409_v38 = vsel %vm407_vm3, %v404_v29, %v406_v36 }
  0x8f   : > { %1255 = vmatpush.msk.msrb.mxu1 %vm229_vm0, %v1420_v5 }
  0x92   : > { %v214_v34 = vpop.permute.xlu0 %213 }
  0x93   : > { %v220_v37 = vsel %vm219_vm1, %v214_v34, %v216_v31 }
  0x94   : > { %1240 = vmatpush.msk.msra.mxu0 %vm229_vm0, %v220_v37  ;;  %1337 = vmatpush.msk.msra.mxu3 %vm229_vm0, %v220_v37 }
  0x95   : > { %1241 = vmatmul.msk.f32.vlgmr.msra.gmra.mxu0 %vm222_vm2, %v1238_v32  ;;  %1242 = vmatmul.msk.f32.vlgmr.msra.gmra.mxu3 %vm222_vm2, %v1239_v35  ;;  %v507_v43 = vpop.permute.xlu2 %506 }
  0x96   : > { %1245 = vmatmul.msk.f32.gmra.mxu1 %vm222_vm2, %v1239_v35  ;;  %1248 = vmatmul.msk.f32.gmra.mxu2 %vm222_vm2, %v1239_v35 }
  0x97   : > { %1249 = vmatpush.msk.msrb.mxu3 %vm229_vm0, %v1422_v6  ;;  %1252 = vmatpush.msk.msrb.mxu0 %vm229_vm0, %v1424_v7 }
  0x99   : > { %1263 = vmatpush.msk.msra.mxu3 %vm229_vm0, %v409_v38  ;;  %1266 = vmatpush.msk.msra.mxu0 %vm229_vm0, %v406_v36 }
  0x9c   : > { %v402_v40 = vpop.permute.xlu1 %401 }
  0x9d   : > { %v408_v42 = vsel %vm407_vm3, %v402_v40, %v404_v29  ;;  %1250 = vmatmul.msk.f32.vlgmr.msrb.gmra.mxu3 %vm222_vm2, %v200_v39  ;;  %1253 = vmatmul.msk.f32.vlgmr.msrb.gmra.mxu0 %vm222_vm2, %v200_v39  ;;  %v614_v50 = vpop.permute.xlu2 %613 }
  0x9e   : > { %1260 = vmatpush.msk.msrb.mxu2 %vm229_vm0, %v408_v42  ;;  %1256 = vmatmul.msk.f32.vlgmr.msrb.gmra.mxu1 %vm222_vm2, %v200_v39 }
  0x9f   : > { %1261 = vmatmul.msk.f32.vlgmr.msrb.gmra.mxu2 %vm222_vm2, %v1258_v41 }
  0xa4   : > { %v511_v46 = vpop.permute.xlu1 %510  ;;  %v509_v47 = vpop.permute.xlu0 %508 }
  0xa5   : > { %1251 = vmatmul.msk.f32.gmra.mxu3 %vm222_vm2, %v201_v44  ;;  %1254 = vmatmul.msk.f32.gmra.mxu0 %vm222_vm2, %v201_v44  ;;  %v514_v48 = vsel %vm512_vm4, %v509_v47, %v511_v46  ;;  %v513_v49 = vsel %vm512_vm4, %v507_v43, %v509_v47  ;;  %v822_v56 = vpop.permute.xlu2 %821 }
  0xa6   : > { %1257 = vmatmul.msk.f32.gmra.mxu1 %vm222_vm2, %v201_v44  ;;  %1277 = vmatpush.msk.msrb.mxu3 %vm229_vm0, %v511_v46 }
  0xa7   : > { %1262 = vmatmul.msk.f32.gmra.mxu2 %vm222_vm2, %v1259_v45  ;;  %1271 = vmatpush.msk.msra.mxu1 %vm229_vm0, %v513_v49 }
  0xa8   : > { %1274 = vmatpush.msk.msra.mxu2 %vm229_vm0, %v514_v48 }
  0xac   : > { %v612_v52 = vpop.permute.xlu1 %611  ;;  %v616_v53 = vpop.permute.xlu0 %615 }
  0xad   : > { %1264 = vmatmul.msk.f32.vlgmr.msra.gmra.mxu3 %vm222_vm2, %v1258_v41  ;;  %1267 = vmatmul.msk.f32.vlgmr.msra.gmra.mxu0 %vm222_vm2, %v1258_v41  ;;  %v618_v54 = vsel %vm617_vm5, %v612_v52, %v614_v50  ;;  %v619_v55 = vsel %vm617_vm5, %v614_v50, %v616_v53  ;;  %v826_v62 = vpop.permute.xlu2 %825 }
  0xae   : > { %1272 = vmatmul.msk.f32.vlgmr.msra.gmra.mxu1 %vm222_vm2, %v1269_v51  ;;  %1288 = vmatpush.msk.msrb.mxu2 %vm229_vm0, %v616_v53 }
  0xaf   : > { %1275 = vmatmul.msk.f32.vlgmr.msra.gmra.mxu2 %vm222_vm2, %v1269_v51  ;;  %1282 = vmatpush.msk.msrb.mxu0 %vm229_vm0, %v618_v54 }
  0xb0   : > { %1285 = vmatpush.msk.msrb.mxu1 %vm229_vm0, %v619_v55 }
  0xb4   : > { %v719_v58 = vpop.permute.xlu1 %718  ;;  %v717_v59 = vpop.permute.xlu0 %716 }
  0xb5   : > { %1265 = vmatmul.msk.f32.gmra.mxu3 %vm222_vm2, %v1259_v45  ;;  %1268 = vmatmul.msk.f32.gmra.mxu0 %vm222_vm2, %v1259_v45  ;;  %v723_v60 = vsel %vm722_vm6, %v717_v59, %v719_v58  ;;  %v927_v5 = vpop.permute.xlu2 %926 }
  0xb6   : > { %1273 = vmatmul.msk.f32.gmra.mxu1 %vm222_vm2, %v1270_v57  ;;  %1293 = vmatpush.msk.msra.mxu3 %vm229_vm0, %v723_v60 }
  0xb7   : > { %1276 = vmatmul.msk.f32.gmra.mxu2 %vm222_vm2, %v1270_v57 }
  0xbc   : > { %v721_v63 = vpop.permute.xlu1 %720  ;;  %v824_v0 = vpop.permute.xlu0 %823 }
  0xbd   : > { %1278 = vmatmul.msk.f32.vlgmr.msrb.gmra.mxu3 %vm222_vm2, %v1269_v51  ;;  %1283 = vmatmul.msk.f32.vlgmr.msrb.gmra.mxu0 %vm222_vm2, %v1280_v61  ;;  %v724_v1 = vsel %vm722_vm6, %v719_v58, %v721_v63  ;;  %v828_v2 = vsel %vm827_vm7, %v822_v56, %v824_v0  ;;  %v829_v3 = vsel %vm827_vm7, %v824_v0, %v826_v62  ;;  %v1034_v11 = vpop.permute.xlu2 %1033 }
  0xbe   : > { %1286 = vmatmul.msk.f32.vlgmr.msrb.gmra.mxu1 %vm222_vm2, %v1280_v61  ;;  %1296 = vmatpush.msk.msra.mxu0 %vm229_vm0, %v724_v1 }
  0xbf   : > { %1289 = vmatmul.msk.f32.vlgmr.msrb.gmra.mxu2 %vm222_vm2, %v1280_v61  ;;  %1299 = vmatpush.msk.msra.mxu1 %vm229_vm0, %v721_v63 }
  0xc0   : > { %1304 = vmatpush.msk.msra.mxu2 %vm229_vm0, %v828_v2  ;;  %1307 = vmatpush.msk.msrb.mxu3 %vm229_vm0, %v829_v3 }
  0xc1   : > { %1310 = vmatpush.msk.msrb.mxu0 %vm229_vm0, %v826_v62 }
  0xc4   : > { %v931_v6 = vpop.permute.xlu1 %930  ;;  %v929_v7 = vpop.permute.xlu0 %928 }
  0xc5   : > { %1279 = vmatmul.msk.f32.gmra.mxu3 %vm222_vm2, %v1270_v57  ;;  %1284 = vmatmul.msk.f32.gmra.mxu0 %vm222_vm2, %v1281_v4  ;;  %v934_v8 = vsel %vm932_vm8, %v929_v7, %v931_v6  ;;  %v933_v9 = vsel %vm932_vm8, %v927_v5, %v929_v7 }
  0xc6   : > { %1287 = vmatmul.msk.f32.gmra.mxu1 %vm222_vm2, %v1281_v4  ;;  %1318 = vmatpush.msk.msrb.mxu2 %vm229_vm0, %v934_v8 }
  0xc7   : > { %1290 = vmatmul.msk.f32.gmra.mxu2 %vm222_vm2, %v1281_v4  ;;  %1315 = vmatpush.msk.msrb.mxu1 %vm229_vm0, %v933_v9 }
  0xcc   : > { %v1036_v13 = vpop.permute.xlu0 %1035  ;;  %v1032_v14 = vpop.permute.xlu1 %1031 }
  0xcd   : > { %1294 = vmatmul.msk.f32.vlgmr.msra.gmra.mxu3 %vm222_vm2, %v1291_v10  ;;  %1297 = vmatmul.msk.f32.vlgmr.msra.gmra.mxu0 %vm222_vm2, %v1291_v10  ;;  %v1039_v15 = vsel %vm1037_vm9, %v1034_v11, %v1036_v13  ;;  %v1038_v16 = vsel %vm1037_vm9, %v1032_v14, %v1034_v11 }
  0xce   : > { %1300 = vmatmul.msk.f32.vlgmr.msra.gmra.mxu1 %vm222_vm2, %v1291_v10  ;;  %1321 = vmatpush.msk.msra.mxu3 %vm229_vm0, %v931_v6 }
  0xcf   : > { %1305 = vmatmul.msk.f32.vlgmr.msra.gmra.mxu2 %vm222_vm2, %v1302_v12  ;;  %1326 = vmatpush.msk.msra.mxu0 %vm229_vm0, %v1038_v16 }
  0xd0   : > { %1329 = vmatpush.msk.msra.mxu1 %vm229_vm0, %v1039_v15  ;;  %1332 = vmatpush.msk.msra.mxu2 %vm229_vm0, %v1036_v13 }
  0xd5   : > { %1295 = vmatmul.msk.f32.gmra.mxu3 %vm222_vm2, %v1292_v17  ;;  %1298 = vmatmul.msk.f32.gmra.mxu0 %vm222_vm2, %v1292_v17 }
  0xd6   : > { %1301 = vmatmul.msk.f32.gmra.mxu1 %vm222_vm2, %v1292_v17 }
  0xd7   : > { %1306 = vmatmul.msk.f32.gmra.mxu2 %vm222_vm2, %v1303_v18 }
  0xdd   : > { %1308 = vmatmul.msk.f32.vlgmr.msrb.gmra.mxu3 %vm222_vm2, %v1302_v12  ;;  %1311 = vmatmul.msk.f32.vlgmr.msrb.gmra.mxu0 %vm222_vm2, %v1302_v12 }
  0xde   : > { %1316 = vmatmul.msk.f32.vlgmr.msrb.gmra.mxu1 %vm222_vm2, %v1313_v22 }
  0xdf   : > { %1319 = vmatmul.msk.f32.vlgmr.msrb.gmra.mxu2 %vm222_vm2, %v1313_v22 }
  0xe5   : > { %1309 = vmatmul.msk.f32.gmra.mxu3 %vm222_vm2, %v1303_v18  ;;  %1312 = vmatmul.msk.f32.gmra.mxu0 %vm222_vm2, %v1303_v18 }
  0xe6   : > { %1317 = vmatmul.msk.f32.gmra.mxu1 %vm222_vm2, %v1314_v24 }
  0xe7   : > { %1320 = vmatmul.msk.f32.gmra.mxu2 %vm222_vm2, %v1314_v24 }
  0xed   : > { %1322 = vmatmul.msk.f32.vlgmr.msra.gmra.mxu3 %vm222_vm2, %v1313_v22  ;;  %1327 = vmatmul.msk.f32.vlgmr.msra.gmra.mxu0 %vm222_vm2, %v1324_v25 }
  0xee   : > { %1330 = vmatmul.msk.f32.vlgmr.msra.gmra.mxu1 %vm222_vm2, %v1324_v25 }
  0xef   : > { %1333 = vmatmul.msk.f32.vlgmr.msra.gmra.mxu2 %vm222_vm2, %v1324_v25 }
  0xf5   : > { %1323 = vmatmul.msk.f32.gmra.mxu3 %vm222_vm2, %v1314_v24  ;;  %1328 = vmatmul.msk.f32.gmra.mxu0 %vm222_vm2, %v1325_v26 }
  0xf6   : > { %1331 = vmatmul.msk.f32.gmra.mxu1 %vm222_vm2, %v1325_v26 }
  0xf7   : > { %1334 = vmatmul.msk.f32.gmra.mxu2 %vm222_vm2, %v1325_v26 }
 0x10b   : > { %v276_v28 = vpop.f32.mrf.mxu1 }
 0x10f   : > { %v299_v29 = vpop.f32.mrf.mxu2 }
 0x112   : > { %v253_v30 = vpop.f32.mrf.mxu0 }
 0x113   : > { %v279_v31 = vpop.f32.mrf.mxu1 }
 0x118   : > { %v256_v32 = vpop.f32.mrf.mxu3 }
 0x119   : > { %v302_v33 = vpop.f32.mrf.mxu2 }
 0x11a   : > { %v363_v34 = vpop.f32.mrf.mxu0 }
 0x11b   : > { %v364_v35 = vadd.f32 %v363_v34, %v276_v28  ;;  %v386_v36 = vpop.f32.mrf.mxu1  ;;  %v1137_v34 = vpop.permute.xlu1 %1136 }
 0x11c   : > { %v387_v37 = vadd.f32 %v386_v36, %v299_v29 }
 0x120   : > { %v340_v38 = vpop.f32.mrf.mxu3 }
 0x121   : > { %v341_v5 = vadd.f32 %v340_v38, %v253_v30 }
 0x122   : > { %v366_v39 = vpop.f32.mrf.mxu0  ;;  %v439_v40 = vpop.f32.mrf.mxu2 }
 0x123   : > { %v367_v41 = vadd.f32 %v366_v39, %v279_v31  ;;  %v389_v42 = vpop.f32.mrf.mxu1  ;;  %v491_v10 = vadd.f32 %v439_v40, %v341_v5 }
 0x124   : > { %v1588_v43 = vadd.f32 %v389_v42, %v302_v33 }
 0x128   : > { %v343_v44 = vpop.f32.mrf.mxu3 }
 0x129   : > { %v344_v14 = vadd.f32 %v343_v44, %v256_v32  ;;  %v1132_v32 = vpop.permute.xlu0 %1131 }
 0x12a   : > { %v442_v45 = vpop.f32.mrf.mxu2  ;;  %v485_v46 = vpop.f32.mrf.mxu0 }
 0x12b   : > { %v544_v47 = vpop.f32.mrf.mxu1  ;;  %v494_v23 = vadd.f32 %v442_v45, %v344_v14  ;;  %v493_v24 = vadd.f32 %v485_v46, %v387_v37  ;;  %v1150_v46 = vpop.permute.xlu2 %1149 }
 0x12c   : > { %v596_v11 = vadd.f32 %v544_v47, %v491_v10 }
 0x130   : > { %v462_v48 = vpop.f32.mrf.mxu3 }
 0x131   : > { %v492_v9 = vadd.f32 %v462_v48, %v364_v35 }
 0x132   : > { %v488_v49 = vpop.f32.mrf.mxu0  ;;  %v567_v50 = vpop.f32.mrf.mxu2 }
 0x133   : > { %v547_v51 = vpop.f32.mrf.mxu1  ;;  %v597_v12 = vadd.f32 %v567_v50, %v492_v9  ;;  %v496_v47 = vadd.f32 %v488_v49, %v1588_v43 }
 0x134   : > { %v599_v26 = vadd.f32 %v547_v51, %v494_v23 }
 0x138   : > { %v465_v52 = vpop.f32.mrf.mxu3 }
 0x139   : > { %v495_v21 = vadd.f32 %v465_v52, %v367_v41 }
 0x13a   : > { %v570_v53 = vpop.f32.mrf.mxu2  ;;  %v649_v54 = vpop.f32.mrf.mxu0 }
 0x13b   : > { %v672_v55 = vpop.f32.mrf.mxu1  ;;  %v701_v15 = vadd.f32 %v649_v54, %v596_v11  ;;  %v600_v29 = vadd.f32 %v570_v53, %v495_v21 }
 0x13c   : > { %v702_v16 = vadd.f32 %v672_v55, %v597_v12 }
 0x140   : > { %v590_v56 = vpop.f32.mrf.mxu3 }
 0x141   : > { %v598_v27 = vadd.f32 %v590_v56, %v493_v24 }
 0x142   : > { %v652_v57 = vpop.f32.mrf.mxu0  ;;  %v695_v58 = vpop.f32.mrf.mxu2 }
 0x143   : > { %v675_v59 = vpop.f32.mrf.mxu1  ;;  %v704_v31 = vadd.f32 %v652_v57, %v599_v26  ;;  %v703_v40 = vadd.f32 %v695_v58, %v598_v27 }
 0x144   : > { %v705_v35 = vadd.f32 %v675_v59, %v600_v29 }
 0x148   : > { %v593_v60 = vpop.f32.mrf.mxu3 }
 0x149   : > { %v601_v53 = vadd.f32 %v593_v60, %v496_v47 }
 0x14a   : > { %v1590_v61 = vpop.f32.mrf.mxu2  ;;  %v777_v62 = vpop.f32.mrf.mxu0 }
 0x14b   : > { %v800_v63 = vpop.f32.mrf.mxu1  ;;  %v807_v22 = vadd.f32 %v777_v62, %v702_v16  ;;  %v706_v60 = vadd.f32 %v1590_v61, %v601_v53 }
 0x14c   : > { %v808_v48 = vadd.f32 %v800_v63, %v703_v40 }
 0x150   : > { %v754_v0 = vpop.f32.mrf.mxu3 }
 0x151   : > { %v806_v19 = vadd.f32 %v754_v0, %v701_v15 }
 0x152   : > { %v780_v1 = vpop.f32.mrf.mxu0  ;;  %v859_v2 = vpop.f32.mrf.mxu2 }
 0x153   : > { %v1592_v3 = vpop.f32.mrf.mxu1  ;;  %v911_v28 = vadd.f32 %v859_v2, %v806_v19  ;;  %v810_v37 = vadd.f32 %v780_v1, %v705_v35 }
 0x158   : > { %v757_v4 = vpop.f32.mrf.mxu3 }
 0x159   : > { %v809_v41 = vadd.f32 %v757_v4, %v704_v31 }
 0x15a   : > { %v862_v6 = vpop.f32.mrf.mxu2  ;;  %v905_v7 = vpop.f32.mrf.mxu0 }
 0x15b   : > { %v964_v8 = vpop.f32.mrf.mxu1  ;;  %v914_v54 = vadd.f32 %v862_v6, %v809_v41  ;;  %v913_v55 = vadd.f32 %v905_v7, %v808_v48  ;;  %v1155_v7 = vpop.permute.xlu1 %1154 }
 0x15c   : > { %v1016_v33 = vadd.f32 %v964_v8, %v911_v28  ;;  %v811_v8 = vadd.f32 %v1592_v3, %v706_v60 }
 0x160   : > { %v882_v13 = vpop.f32.mrf.mxu3 }
 0x161   : > { %v912_v25 = vadd.f32 %v882_v13, %v807_v22 }
 0x162   : > { %v908_v17 = vpop.f32.mrf.mxu0  ;;  %v987_v18 = vpop.f32.mrf.mxu2 }
 0x163   : > { %v967_v20 = vpop.f32.mrf.mxu1  ;;  %v1017_v36 = vadd.f32 %v987_v18, %v912_v25  ;;  %v916_v12 = vadd.f32 %v908_v17, %v811_v8 }
 0x164   : > { %v1019_v59 = vadd.f32 %v967_v20, %v914_v54 }
 0x168   : > { %v885_v30 = vpop.f32.mrf.mxu3 }
 0x169   : > { %v915_v51 = vadd.f32 %v885_v30, %v810_v37 }
 0x16a   : > { %v990_v38 = vpop.f32.mrf.mxu2  ;;  %v1069_v39 = vpop.f32.mrf.mxu0 }
 0x16b   : > { %v1121_v42 = vadd.f32 %v1069_v39, %v1016_v33  ;;  %v1092_v44 = vpop.f32.mrf.mxu1  ;;  %v1020_v49 = vadd.f32 %v990_v38, %v915_v51 }
 0x16c   : > { %v1122_v45 = vadd.f32 %v1092_v44, %v1017_v36 }
 0x16d   : > { %v1139_v50 = vmul.f32 %v1132_v32, %v1121_v42 }
 0x16e   : > { %v1140_v52 = vmul.f32 %v1132_v32, %v1122_v45 }
 0x16f   : > { %v1157_v56 = vadd.f32 %v1150_v46, %v1139_v50 }
 0x170   : > { %v1158_v57 = vadd.f32 %v1150_v46, %v1140_v52  ;;  %v1010_v58 = vpop.f32.mrf.mxu3 }
 0x171   : > { %v1163_v62 = vmax.f32 %v1157_v56, 0.0  ;;  %v1018_v43 = vadd.f32 %v1010_v58, %v913_v55 }
 0x172   : > { %v1164_v63 = vmax.f32 %v1158_v57, 0.0  ;;  %v1072_v0 = vpop.f32.mrf.mxu0  ;;  %v1115_v1 = vpop.f32.mrf.mxu2 }
 0x173   : > { %1169 = vst [vmem:[%s1599_s28] sm:$0xff] %v1163_v62  ;;  %v1124_v2 = vadd.f32 %v1072_v0, %v1019_v59  ;;  %v1095_v4 = vpop.f32.mrf.mxu1  ;;  %v1123_v5 = vadd.f32 %v1115_v1, %v1018_v43 }
 0x174   : > { %1170 = vst [vmem:[%s1599_s28 + $0x8] sm:$0xff] %v1164_v63  ;;  %v1125_v6 = vadd.f32 %v1095_v4, %v1020_v49 }
 0x175   : > { %v1142_v9 = vmul.f32 %v1137_v34, %v1124_v2  ;;  %v1141_v10 = vmul.f32 %v1132_v32, %v1123_v5 }
 0x176   : > { %v1143_v11 = vmul.f32 %v1137_v34, %v1125_v6 }
 0x177   : > { %v1159_v13 = vadd.f32 %v1150_v46, %v1141_v10  ;;  %v1160_v14 = vadd.f32 %v1155_v7, %v1142_v9 }
 0x178   : > { %v1161_v61 = vadd.f32 %v1155_v7, %v1143_v11  ;;  %v1013_v15 = vpop.f32.mrf.mxu3 }
 0x179   : > { %v1165_v16 = vmax.f32 %v1159_v13, 0.0  ;;  %v1166_v18 = vmax.f32 %v1160_v14, 0.0  ;;  %v1021_v19 = vadd.f32 %v1013_v15, %v916_v12 }
 0x17a   : > { %v1167_v20 = vmax.f32 %v1161_v61, 0.0  ;;  %v1118_v21 = vpop.f32.mrf.mxu2 }
 0x17b   : > { %1172 = vst.msk [vmem:[%s1599_s28 + $0x10] sm:$0xff] %vm1171_vm10, %v1165_v16  ;;  %v1126_v22 = vadd.f32 %v1118_v21, %v1021_v19 }
 0x17c   : > { %1173 = vst [vmem:[%s1599_s28 + $0x18] sm:$0xff] %v1166_v18 }
 0x17d   : > { %1174 = vst [vmem:[%s1599_s28 + $0x20] sm:$0xff] %v1167_v20  ;;  %v1144_v3 = vmul.f32 %v1137_v34, %v1126_v22 }
 0x17f   : > { %v1162_v23 = vadd.f32 %v1155_v7, %v1144_v3 }
 0x181   : > { %v1168_v24 = vmax.f32 %v1162_v23, 0.0 }
 0x183   : > { %1175 = vst.msk [vmem:[%s1599_s28 + $0x28] sm:$0xff] %vm1171_vm10, %v1168_v24 }
 0x184 PF: > { %s14_s15 = sadd.s32 1, %s1366_s15  }
 0x185   : > { %p11_p4 = scmp.ge.s32.totalorder %s14_s15, 4  }
 0x187   :  { %13 = sbr.rel (!%p11_p4) target bundleno = 1 (0x1), region = 83 }

</bundles_post_ra>
